<compile_context>
chip_gen: v7x
topology: tpu7x:2x2x1
jax: 0.10.0
libtpu: 0.0.40
codegen_flags: <defaults>
</compile_context>

<pallas_src>
import functools
import math

import jax
import jax.numpy as jnp
import numpy as np
from jax import lax
from jax.experimental import pallas as pl
from jax.experimental.pallas import tpu as pltpu

EPS = 1e-8


def _round_up(x, m):
    return ((x + m - 1) // m) * m


def _layer_norm(z):
    # Matches Model._layer_norm: z / (sqrt(mean(z**2, -1, keepdim)) + eps)
    mean_sq = jnp.mean(z * z, axis=-1, keepdims=True)
    inv = pl.reciprocal(jnp.sqrt(mean_sq) + EPS, approx=False)  # EUP, exact
    return z * inv


def ff_forward_kernel(num_layers, feat_dim, feat_pad_dim, num_classes, *refs):
    """layer_norm -> [Linear, ReLU, layer_norm] * L -> fused classifier."""
    x_ref = refs[0]
    layer_refs = refs[1:1 + 2 * num_layers]           # (W_t, b) per layer
    wc_ref = refs[1 + 2 * num_layers]                 # (feat_pad_dim, nc_pad)
    feat_ref = refs[2 + 2 * num_layers]               # out: (TB, feat_pad_dim)
    logits_ref = refs[3 + 2 * num_layers]             # out: (TB, nc_pad)

    z = _layer_norm(x_ref[...].astype(jnp.float32))

    feats = []
    for idx in range(num_layers):
        w = layer_refs[2 * idx][...]                  # (in, out)
        b = layer_refs[2 * idx + 1][...]              # (1, out)
        z = jnp.dot(z, w, preferred_element_type=jnp.float32) + b
        z = jnp.maximum(z, 0.0)                       # ReLU_full_grad forward
        z = _layer_norm(z)
        if idx >= 1:
            feats.append(z)

    # Single lane concat + zero-pad to a lane-dense (multiple of 128) slab.
    feat = feats[0] if len(feats) == 1 else jnp.concatenate(feats, axis=-1)
    if feat_pad_dim > feat_dim:
        pad = jnp.zeros((feat.shape[0], feat_pad_dim - feat_dim), jnp.float32)
        feat = jnp.concatenate([feat, pad], axis=-1)
    feat_ref[...] = feat                              # one unmasked wide store

    # One fused classifier matmul on the padded slab (padded wc rows/cols = 0).
    logits = jnp.dot(feat, wc_ref[...], preferred_element_type=jnp.float32)
    # Row max over the REAL classes only (padded columns are zeros).
    col = lax.broadcasted_iota(jnp.int32, logits.shape, 1)
    masked = jnp.where(col < num_classes, logits, -jnp.inf)
    m = jnp.max(masked, axis=-1, keepdims=True)
    logits_ref[...] = logits - m                      # one unmasked wide store


def ff_model_forward(x, weights_t, biases, wc, *, batch_tile=256):
    """x: (B, D_in); weights_t[i]: (in, out); biases[i]: (out,); wc: (feat_dim, 10)."""
    B, d_in = x.shape
    num_layers = len(weights_t)
    if num_layers < 2:
        # With a single layer the classification-feature list would be empty.
        raise ValueError("ff_model_forward requires num_layers >= 2")
    hidden_dim = weights_t[0].shape[1]
    feat_dim = (num_layers - 1) * hidden_dim
    num_classes = wc.shape[1]

    feat_pad_dim = _round_up(feat_dim, 128)           # lane-dense feature slab
    nc_pad = _round_up(num_classes, 128)              # lane-dense logits slab

    # Batch tiling: multiple of 8 sublanes, padded batch divisible by the tile.
    tb = batch_tile if B >= batch_tile else _round_up(B, 8)
    b_pad = _round_up(B, tb)
    xf = x.astype(jnp.float32)
    if b_pad != B:
        xf = jnp.concatenate(
            [xf, jnp.zeros((b_pad - B, d_in), jnp.float32)], axis=0)

    # Zero-pad classifier weights once in the wrapper (rows & columns).
    wc_pad = jnp.zeros((feat_pad_dim, nc_pad), jnp.float32)
    wc_pad = wc_pad.at[:feat_dim, :num_classes].set(wc.astype(jnp.float32))

    args = [xf]
    in_specs = [pl.BlockSpec((tb, d_in), lambda i: (i, 0))]
    for w, b in zip(weights_t, biases):
        wf = w.astype(jnp.float32)
        bf = b.reshape(1, -1).astype(jnp.float32)
        args.append(wf)
        in_specs.append(pl.BlockSpec(wf.shape, lambda i: (0, 0)))   # resident
        args.append(bf)
        in_specs.append(pl.BlockSpec(bf.shape, lambda i: (0, 0)))   # resident
    args.append(wc_pad)
    in_specs.append(pl.BlockSpec(wc_pad.shape, lambda i: (0, 0)))   # resident

    kernel = functools.partial(
        ff_forward_kernel, num_layers, feat_dim, feat_pad_dim, num_classes)

    feat_p, logits_p = pl.pallas_call(
        kernel,
        out_shape=(jax.ShapeDtypeStruct((b_pad, feat_pad_dim), jnp.float32),
                   jax.ShapeDtypeStruct((b_pad, nc_pad), jnp.float32)),
        grid=(b_pad // tb,),
        in_specs=in_specs,
        out_specs=(pl.BlockSpec((tb, feat_pad_dim), lambda i: (i, 0)),
                   pl.BlockSpec((tb, nc_pad), lambda i: (i, 0))),
        compiler_params=pltpu.CompilerParams(
            dimension_semantics=("parallel",),        # both TCs take blocks
            vmem_limit_bytes=32 * 1024 * 1024),
    )(*args)

    # Slice padded lanes / rows back to the true shapes.
    return feat_p[:B, :feat_dim], logits_p[:B, :num_classes]


def reference_forward(x, weights_t, biases, wc):
    def ln(z):
        return z / (jnp.sqrt(jnp.mean(z * z, axis=-1, keepdims=True)) + EPS)
    z = ln(x)
    feats = []
    for i, (w, b) in enumerate(zip(weights_t, biases)):
        z = ln(jnp.maximum(z @ w + b, 0.0))
        if i >= 1:
            feats.append(z)
    feat = jnp.concatenate(feats, axis=-1)
    logits = feat @ wc
    logits = logits - jnp.max(logits, axis=-1, keepdims=True)
    return feat, logits


def cross_entropy(logits, labels):
    lse = jax.nn.logsumexp(logits, axis=-1)
    picked = jnp.take_along_axis(logits, labels[:, None], axis=-1)[:, 0]
    return jnp.mean(lse - picked)


if __name__ == "__main__":
    # Small config consistent with the module: num_layers=3, hidden_dim=32,
    # flattened input of 64 features (e.g. 1x8x8 image), batch=8.
    B, D_IN, HIDDEN, NUM_LAYERS = 8, 64, 32, 3
    key = jax.random.PRNGKey(0)
    k_x, k_lab, *k_ws = jax.random.split(key, 2 + NUM_LAYERS)

    x = jax.random.normal(k_x, (B, D_IN), dtype=jnp.float32)
    labels = jax.random.randint(k_lab, (B,), 0, 10)

    # _init_weights: Linear weight ~ N(0, 1/sqrt(out_features)), bias = 0.
    weights_t, biases = [], []
    in_dim = D_IN
    for i in range(NUM_LAYERS):
        std = 1.0 / math.sqrt(HIDDEN)  # weight.shape[0] == out_features
        weights_t.append(std * jax.random.normal(k_ws[i], (in_dim, HIDDEN),
                                                 dtype=jnp.float32))
        biases.append(jnp.zeros((HIDDEN,), dtype=jnp.float32))
        in_dim = HIDDEN

    # linear_classifier: zero-initialized, no bias.
    wc = jnp.zeros(((NUM_LAYERS - 1) * HIDDEN, 10), dtype=jnp.float32)

    feat, logits = ff_model_forward(x, weights_t, biases, wc)
    jax.block_until_ready((feat, logits))

    # Glue: downstream classification loss / accuracy (tiny (B,10) reductions).
    loss = cross_entropy(logits, labels)
    acc = jnp.mean((jnp.argmax(logits, axis=-1) == labels).astype(jnp.float32))
    scalar_outputs = {"Loss": loss, "classification_accuracy": acc}
    jax.block_until_ready(scalar_outputs)

    # Correctness check vs pure-JAX reference.
    feat_ref, logits_ref_ = reference_forward(x, weights_t, biases, wc)
    np.testing.assert_allclose(np.asarray(feat), np.asarray(feat_ref),
                               rtol=1e-5, atol=1e-5)
    np.testing.assert_allclose(np.asarray(logits), np.asarray(logits_ref_),
                               rtol=1e-5, atol=1e-5)
    assert np.isfinite(float(scalar_outputs["Loss"]))

    print("KERNEL_OK")
</pallas_src>

<mosaic_0001>
module attributes {stable_mosaic.version = 11 : i64} {
  func.func @ff_forward_kernel(%arg0: i32, %arg1: memref<8x64xf32, #tpu.memory_space<vmem>>, %arg2: memref<64x32xf32, #tpu.memory_space<vmem>>, %arg3: memref<1x32xf32, #tpu.memory_space<vmem>>, %arg4: memref<32x32xf32, #tpu.memory_space<vmem>>, %arg5: memref<1x32xf32, #tpu.memory_space<vmem>>, %arg6: memref<32x32xf32, #tpu.memory_space<vmem>>, %arg7: memref<1x32xf32, #tpu.memory_space<vmem>>, %arg8: memref<128x128xf32, #tpu.memory_space<vmem>>, %arg9: memref<8x128xf32, #tpu.memory_space<vmem>>, %arg10: memref<8x128xf32, #tpu.memory_space<vmem>>) attributes {dimension_semantics = [#tpu.dimension_semantics<parallel>], iteration_bounds = array<i64: 1>, scalar_prefetch = 0 : i64, scratch_operands = 0 : i64, tpu.core_type = #tpu.core_type<tc>, window_params = [{transform_indices = @transform_0, window_bounds = array<i64: 8, 64>}, {pipeline_mode = #tpu.pipeline_mode<synchronous>, transform_indices = @transform_1, window_bounds = array<i64: 64, 32>}, {pipeline_mode = #tpu.pipeline_mode<synchronous>, transform_indices = @transform_2, window_bounds = array<i64: 1, 32>}, {pipeline_mode = #tpu.pipeline_mode<synchronous>, transform_indices = @transform_3, window_bounds = array<i64: 32, 32>}, {pipeline_mode = #tpu.pipeline_mode<synchronous>, transform_indices = @transform_4, window_bounds = array<i64: 1, 32>}, {pipeline_mode = #tpu.pipeline_mode<synchronous>, transform_indices = @transform_5, window_bounds = array<i64: 32, 32>}, {pipeline_mode = #tpu.pipeline_mode<synchronous>, transform_indices = @transform_6, window_bounds = array<i64: 1, 32>}, {pipeline_mode = #tpu.pipeline_mode<synchronous>, transform_indices = @transform_7, window_bounds = array<i64: 128, 128>}, {transform_indices = @transform_8, window_bounds = array<i64: 8, 128>}, {transform_indices = @transform_9, window_bounds = array<i64: 8, 128>}]} {
    %c0 = arith.constant 0 : index
    %c0_0 = arith.constant 0 : index
    %0 = vector.load %arg1[%c0, %c0_0] : memref<8x64xf32, #tpu.memory_space<vmem>>, vector<8x64xf32>
    %1 = arith.mulf %0, %0 : vector<8x64xf32>
    %cst = arith.constant dense<0.000000e+00> : vector<8xf32>
    %2 = vector.multi_reduction <add>, %1, %cst [1] : vector<8x64xf32> to vector<8xf32>
    %3 = vector.shape_cast %2 : vector<8xf32> to vector<8x1xf32>
    %cst_1 = arith.constant 6.400000e+01 : f32
    %4 = vector.broadcast %cst_1 : f32 to vector<8x1xf32>
    %5 = arith.divf %3, %4 : vector<8x1xf32>
    %6 = math.sqrt %5 : vector<8x1xf32>
    %cst_2 = arith.constant 9.99999993E-9 : f32
    %7 = vector.broadcast %cst_2 : f32 to vector<8x1xf32>
    %8 = arith.addf %6, %7 : vector<8x1xf32>
    %9 = tpu.reciprocal %8 : vector<8x1xf32> -> vector<8x1xf32>
    %10 = vector.broadcast %9 : vector<8x1xf32> to vector<8x64xf32>
    %11 = arith.mulf %0, %10 : vector<8x64xf32>
    %c0_3 = arith.constant 0 : index
    %c0_4 = arith.constant 0 : index
    %12 = vector.load %arg2[%c0_3, %c0_4] : memref<64x32xf32, #tpu.memory_space<vmem>>, vector<64x32xf32>
    %c0_5 = arith.constant 0 : index
    %c0_6 = arith.constant 0 : index
    %13 = vector.load %arg3[%c0_5, %c0_6] : memref<1x32xf32, #tpu.memory_space<vmem>>, vector<1x32xf32>
    %cst_7 = arith.constant dense<0.000000e+00> : vector<8x32xf32>
    %14 = tpu.matmul %11, %12, %cst_7 {dimension_numbers = #tpu.dot_dimension_numbers<[1], [0], [0], [1], [0, 0, 1, 1], [], []>} : vector<8x64xf32>, vector<64x32xf32>, vector<8x32xf32> -> vector<8x32xf32>
    %15 = vector.broadcast %13 : vector<1x32xf32> to vector<8x32xf32>
    %16 = arith.addf %14, %15 : vector<8x32xf32>
    %cst_8 = arith.constant 0.000000e+00 : f32
    %17 = vector.broadcast %cst_8 : f32 to vector<8x32xf32>
    %18 = arith.maximumf %16, %17 : vector<8x32xf32>
    %19 = arith.mulf %18, %18 : vector<8x32xf32>
    %cst_9 = arith.constant dense<0.000000e+00> : vector<8xf32>
    %20 = vector.multi_reduction <add>, %19, %cst_9 [1] : vector<8x32xf32> to vector<8xf32>
    %21 = vector.shape_cast %20 : vector<8xf32> to vector<8x1xf32>
    %cst_10 = arith.constant 3.200000e+01 : f32
    %22 = vector.broadcast %cst_10 : f32 to vector<8x1xf32>
    %23 = arith.divf %21, %22 : vector<8x1xf32>
    %24 = math.sqrt %23 : vector<8x1xf32>
    %cst_11 = arith.constant 9.99999993E-9 : f32
    %25 = vector.broadcast %cst_11 : f32 to vector<8x1xf32>
    %26 = arith.addf %24, %25 : vector<8x1xf32>
    %27 = tpu.reciprocal %26 : vector<8x1xf32> -> vector<8x1xf32>
    %28 = vector.broadcast %27 : vector<8x1xf32> to vector<8x32xf32>
    %29 = arith.mulf %18, %28 : vector<8x32xf32>
    %c0_12 = arith.constant 0 : index
    %c0_13 = arith.constant 0 : index
    %30 = vector.load %arg4[%c0_12, %c0_13] : memref<32x32xf32, #tpu.memory_space<vmem>>, vector<32x32xf32>
    %c0_14 = arith.constant 0 : index
    %c0_15 = arith.constant 0 : index
    %31 = vector.load %arg5[%c0_14, %c0_15] : memref<1x32xf32, #tpu.memory_space<vmem>>, vector<1x32xf32>
    %cst_16 = arith.constant dense<0.000000e+00> : vector<8x32xf32>
    %32 = tpu.matmul %29, %30, %cst_16 {dimension_numbers = #tpu.dot_dimension_numbers<[1], [0], [0], [1], [0, 0, 1, 1], [], []>} : vector<8x32xf32>, vector<32x32xf32>, vector<8x32xf32> -> vector<8x32xf32>
    %33 = vector.broadcast %31 : vector<1x32xf32> to vector<8x32xf32>
    %34 = arith.addf %32, %33 : vector<8x32xf32>
    %cst_17 = arith.constant 0.000000e+00 : f32
    %35 = vector.broadcast %cst_17 : f32 to vector<8x32xf32>
    %36 = arith.maximumf %34, %35 : vector<8x32xf32>
    %37 = arith.mulf %36, %36 : vector<8x32xf32>
    %cst_18 = arith.constant dense<0.000000e+00> : vector<8xf32>
    %38 = vector.multi_reduction <add>, %37, %cst_18 [1] : vector<8x32xf32> to vector<8xf32>
    %39 = vector.shape_cast %38 : vector<8xf32> to vector<8x1xf32>
    %cst_19 = arith.constant 3.200000e+01 : f32
    %40 = vector.broadcast %cst_19 : f32 to vector<8x1xf32>
    %41 = arith.divf %39, %40 : vector<8x1xf32>
    %42 = math.sqrt %41 : vector<8x1xf32>
    %cst_20 = arith.constant 9.99999993E-9 : f32
    %43 = vector.broadcast %cst_20 : f32 to vector<8x1xf32>
    %44 = arith.addf %42, %43 : vector<8x1xf32>
    %45 = tpu.reciprocal %44 : vector<8x1xf32> -> vector<8x1xf32>
    %46 = vector.broadcast %45 : vector<8x1xf32> to vector<8x32xf32>
    %47 = arith.mulf %36, %46 : vector<8x32xf32>
    %c0_21 = arith.constant 0 : index
    %c0_22 = arith.constant 0 : index
    %48 = vector.load %arg6[%c0_21, %c0_22] : memref<32x32xf32, #tpu.memory_space<vmem>>, vector<32x32xf32>
    %c0_23 = arith.constant 0 : index
    %c0_24 = arith.constant 0 : index
    %49 = vector.load %arg7[%c0_23, %c0_24] : memref<1x32xf32, #tpu.memory_space<vmem>>, vector<1x32xf32>
    %cst_25 = arith.constant dense<0.000000e+00> : vector<8x32xf32>
    %50 = tpu.matmul %47, %48, %cst_25 {dimension_numbers = #tpu.dot_dimension_numbers<[1], [0], [0], [1], [0, 0, 1, 1], [], []>} : vector<8x32xf32>, vector<32x32xf32>, vector<8x32xf32> -> vector<8x32xf32>
    %51 = vector.broadcast %49 : vector<1x32xf32> to vector<8x32xf32>
    %52 = arith.addf %50, %51 : vector<8x32xf32>
    %cst_26 = arith.constant 0.000000e+00 : f32
    %53 = vector.broadcast %cst_26 : f32 to vector<8x32xf32>
    %54 = arith.maximumf %52, %53 : vector<8x32xf32>
    %55 = arith.mulf %54, %54 : vector<8x32xf32>
    %cst_27 = arith.constant dense<0.000000e+00> : vector<8xf32>
    %56 = vector.multi_reduction <add>, %55, %cst_27 [1] : vector<8x32xf32> to vector<8xf32>
    %57 = vector.shape_cast %56 : vector<8xf32> to vector<8x1xf32>
    %cst_28 = arith.constant 3.200000e+01 : f32
    %58 = vector.broadcast %cst_28 : f32 to vector<8x1xf32>
    %59 = arith.divf %57, %58 : vector<8x1xf32>
    %60 = math.sqrt %59 : vector<8x1xf32>
    %cst_29 = arith.constant 9.99999993E-9 : f32
    %61 = vector.broadcast %cst_29 : f32 to vector<8x1xf32>
    %62 = arith.addf %60, %61 : vector<8x1xf32>
    %63 = tpu.reciprocal %62 : vector<8x1xf32> -> vector<8x1xf32>
    %64 = vector.broadcast %63 : vector<8x1xf32> to vector<8x32xf32>
    %65 = arith.mulf %54, %64 : vector<8x32xf32>
    %66 = tpu.concatenate %47, %65 in 1 : vector<8x32xf32>, vector<8x32xf32> -> vector<8x64xf32>
    %cst_30 = arith.constant 0.000000e+00 : f32
    %67 = vector.broadcast %cst_30 : f32 to vector<8x64xf32>
    %68 = tpu.concatenate %66, %67 in 1 : vector<8x64xf32>, vector<8x64xf32> -> vector<8x128xf32>
    %c0_31 = arith.constant 0 : index
    %c0_32 = arith.constant 0 : index
    %69 = vector.load %arg9[%c0_31, %c0_32] : memref<8x128xf32, #tpu.memory_space<vmem>>, vector<8x128xf32>
    tpu.vector_store %arg9[%c0_31, %c0_32], %68 {strides = array<i32>} : memref<8x128xf32, #tpu.memory_space<vmem>>, vector<8x128xf32>,
    %c0_33 = arith.constant 0 : index
    %c0_34 = arith.constant 0 : index
    %70 = vector.load %arg8[%c0_33, %c0_34] : memref<128x128xf32, #tpu.memory_space<vmem>>, vector<128x128xf32>
    %cst_35 = arith.constant dense<0.000000e+00> : vector<8x128xf32>
    %71 = tpu.matmul %68, %70, %cst_35 {dimension_numbers = #tpu.dot_dimension_numbers<[1], [0], [0], [1], [0, 0, 1, 1], [], []>} : vector<8x128xf32>, vector<128x128xf32>, vector<8x128xf32> -> vector<8x128xf32>
    %72 = tpu.iota {dimensions = array<i32: 1>} : vector<8x128xi32>
    %c10_i32 = arith.constant 10 : i32
    %73 = vector.broadcast %c10_i32 : i32 to vector<8x128xi32>
    %74 = arith.cmpi slt, %72, %73 : vector<8x128xi32>
    %cst_36 = arith.constant 0xFF800000 : f32
    %75 = vector.broadcast %cst_36 : f32 to vector<8x128xf32>
    %76 = arith.select %74, %71, %75 : vector<8x128xi1>, vector<8x128xf32>
    %cst_37 = arith.constant dense<0xFF800000> : vector<8xf32>
    %77 = vector.multi_reduction <maximumf>, %76, %cst_37 [1] : vector<8x128xf32> to vector<8xf32>
    %78 = vector.shape_cast %77 : vector<8xf32> to vector<8x1xf32>
    %79 = vector.broadcast %78 : vector<8x1xf32> to vector<8x128xf32>
    %80 = arith.subf %71, %79 : vector<8x128xf32>
    %c0_38 = arith.constant 0 : index
    %c0_39 = arith.constant 0 : index
    %81 = vector.load %arg10[%c0_38, %c0_39] : memref<8x128xf32, #tpu.memory_space<vmem>>, vector<8x128xf32>
    tpu.vector_store %arg10[%c0_38, %c0_39], %80 {strides = array<i32>} : memref<8x128xf32, #tpu.memory_space<vmem>>, vector<8x128xf32>,
    return
  }
  func.func @transform_0(%arg0: i32) -> (i32, i32) {
    %c0_i32 = arith.constant 0 : i32
    %c0_i32_0 = arith.constant 0 : i32
    return %arg0, %c0_i32 : i32, i32
  }
  func.func @transform_1(%arg0: i32) -> (i32, i32) {
    %c0_i32 = arith.constant 0 : i32
    %c0_i32_0 = arith.constant 0 : i32
    %c0_i32_1 = arith.constant 0 : i32
    return %c0_i32, %c0_i32_0 : i32, i32
  }
  func.func @transform_2(%arg0: i32) -> (i32, i32) {
    %c0_i32 = arith.constant 0 : i32
    %c0_i32_0 = arith.constant 0 : i32
    %c0_i32_1 = arith.constant 0 : i32
    return %c0_i32, %c0_i32_0 : i32, i32
  }
  func.func @transform_3(%arg0: i32) -> (i32, i32) {
    %c0_i32 = arith.constant 0 : i32
    %c0_i32_0 = arith.constant 0 : i32
    %c0_i32_1 = arith.constant 0 : i32
    return %c0_i32, %c0_i32_0 : i32, i32
  }
  func.func @transform_4(%arg0: i32) -> (i32, i32) {
    %c0_i32 = arith.constant 0 : i32
    %c0_i32_0 = arith.constant 0 : i32
    %c0_i32_1 = arith.constant 0 : i32
    return %c0_i32, %c0_i32_0 : i32, i32
  }
  func.func @transform_5(%arg0: i32) -> (i32, i32) {
    %c0_i32 = arith.constant 0 : i32
    %c0_i32_0 = arith.constant 0 : i32
    %c0_i32_1 = arith.constant 0 : i32
    return %c0_i32, %c0_i32_0 : i32, i32
  }
  func.func @transform_6(%arg0: i32) -> (i32, i32) {
    %c0_i32 = arith.constant 0 : i32
    %c0_i32_0 = arith.constant 0 : i32
    %c0_i32_1 = arith.constant 0 : i32
    return %c0_i32, %c0_i32_0 : i32, i32
  }
  func.func @transform_7(%arg0: i32) -> (i32, i32) {
    %c0_i32 = arith.constant 0 : i32
    %c0_i32_0 = arith.constant 0 : i32
    %c0_i32_1 = arith.constant 0 : i32
    return %c0_i32, %c0_i32_0 : i32, i32
  }
  func.func @transform_8(%arg0: i32) -> (i32, i32) {
    %c0_i32 = arith.constant 0 : i32
    %c0_i32_0 = arith.constant 0 : i32
    return %arg0, %c0_i32 : i32, i32
  }
  func.func @transform_9(%arg0: i32) -> (i32, i32) {
    %c0_i32 = arith.constant 0 : i32
    %c0_i32_0 = arith.constant 0 : i32
    return %arg0, %c0_i32 : i32, i32
  }
}

</mosaic_0001>

<bundles_post_ra>
// kernel: tpu_custom_call.1
= control target key start
LH: loop header
LB: loop body
LE: loop exit
PB: predicated region body
PF: predicated region fallthrough
CT: control target
= control target key end

     0   :  { %15 = vsyncpa [#allocation3], 0  ;;  %s958_s0 = inlined_call_operand.vmem [shape: f32[8,64], index: 0, kind: input, shape index: {}]   ;;  %s959_s1 = inlined_call_operand.vmem [shape: f32[64,32], index: 1, kind: input, shape index: {}]   ;;  %s960_s2 = inlined_call_operand.vmem [shape: f32[1,32], index: 2, kind: input, shape index: {}]   ;;  %s961_s3 = inlined_call_operand.vmem [shape: f32[32,32], index: 3, kind: input, shape index: {}]   ;;  %s962_s4 = inlined_call_operand.vmem [shape: f32[1,32], index: 4, kind: input, shape index: {}]   ;;  %s963_s5 = inlined_call_operand.vmem [shape: f32[32,32], index: 5, kind: input, shape index: {}]   ;;  %s964_s6 = inlined_call_operand.vmem [shape: f32[1,32], index: 6, kind: input, shape index: {}]   ;;  %s965_s7 = inlined_call_operand.hbm [shape: f32[128,128], index: 7, kind: input, shape index: {}]   ;;  %s966_s8 = inlined_call_operand.hbm [shape: f32[8,128], index: 8, kind: output, shape index: {0}]   ;;  %s967_s9 = inlined_call_operand.hbm [shape: f32[8,128], index: 9, kind: output, shape index: {1}]  }
   0x1   :  { %16 = vsyncpa [#allocation4], 0 }
   0x2   :  { %17 = vsyncpa [#allocation7], 0  ;;  %s765_s30 = smov [#allocation2]   ;;  %s693_s13 = scalar_lea.hbm %s965_s7, 2048 }
   0x3   :  { %s37_s10 = sshll.u32 %s765_s30, 4  ;;  %p694_p0 = scmp.ne.s32.totalorder %s965_s7, %s693_s13  ;;  %s38_s10 = int_to_ptr.vmem [resolvable:$true] %s37_s10 }
   0x4   :  { %p697_p1 = scmp.lt.u32.totalorder %s693_s13, %s965_s7 }
   0x6   :  { %p699_p2 = pnand %p697_p1, %p694_p0 }
   0x8   :  { %702 = shalt.err (!%p699_p2)
}
   0x9   :  { %s703_s18 = scalar_lea.vmem %s38_s10, 2048  ;;  %p708_p4 = scmp.lt.s32.totalorder %s38_s10, %s38_s10 }
   0xa   :  { %p704_p3 = scmp.ne.s32.totalorder %s38_s10, %s703_s18  ;;  %p709_p5 = scmp.lt.s32.totalorder %s703_s18, %s703_s18 }
   0xc   :  { %p710_p6 = por %p709_p5, %p708_p4 }
   0xe   :  { %p711_p7 = pnand %p710_p6, %p704_p3 }
  0x10   :  { %714 = shalt.err (!%p711_p7)
}
  0x11   :  { %s766_s19 = smov 128   ;;  %s767_s20 = smov 8  }
  0x12   :  { %43 = dma.hbm_to_vmem [thread:$0]  %s965_s7, 2048, %s38_s10, [#allocation3], %s766_s19, %s766_s19, %s767_s20  }
  0x13   :  { %759 = dma.done.wait [#allocation3], 2048  }
  0x14   :  { %760 = vsyncadd [#allocation3], 4294965248  ;;  %v47_v0 = vld [vmem:[%s958_s0] sm:$0xff]  ;;  %vm49_vm0 = vcmask 523264   ;;  %v66_v4 = vld [vmem:[%s959_s1 + $0x8] sm:$0xff]  ;;  %v768_v8 = vmov 0.0|0.0  }
  0x15   :  { %v48_v1 = vmul.f32 %v47_v0, %v47_v0  ;;  %v65_v3 = vld [vmem:[%s959_s1] sm:$0xff]  ;;  %v67_v6 = vld [vmem:[%s959_s1 + $0x10] sm:$0xff]  ;;  %v68_v7 = vld [vmem:[%s959_s1 + $0x18] sm:$0xff]  ;;  %620 = vmatprep.subr.bf16.mxu1 %v768_v8  ;;  %vm769_vm1 = vmmov 0   ;;  %v770_v9 = vmov 0.0   ;;  %644 = vmatprep.subr.bf16.mxu0 %v768_v8  ;;  %vm155_vm4 = vcmask 261120  }
  0x16   :  { %v621_v5 = vpack.c.bf16 %v66_v4, %v65_v3  ;;  %560 = vmatprep.mubr.msk.f32.mxu1 %vm769_vm1, %v770_v9  ;;  %v624_v10 = vpack.c.bf16 %v68_v7, %v67_v6  ;;  %v69_v11 = vld [vmem:[%s959_s1 + $0x20] sm:$0xff]  ;;  %v70_v12 = vld [vmem:[%s959_s1 + $0x28] sm:$0xff]  ;;  %617 = vmatprep.mubr.msk.f32.mxu0 %vm769_vm1, %v770_v9  ;;  %v71_v14 = vld [vmem:[%s959_s1 + $0x30] sm:$0xff]  ;;  %s772_s12 = smov [#allocation5]  }
  0x17   :  { %v50_v2 = vsel %vm49_vm0, %v48_v1, 0.0  ;;  %v627_v13 = vpack.c.bf16 %v70_v12, %v69_v11  ;;  %v72_v15 = vld [vmem:[%s959_s1 + $0x38] sm:$0xff]  ;;  %v501_v27 = vld [vmem:[%s960_s2] ss:$0 sm:$0xff]  ;;  %v172_v35 = vld [vmem:[%s961_s3 + $0x8] sm:$0xff]  ;;  %s478_s13 = sshll.u32 %s772_s12, 4  ;;  %s479_s13 = int_to_ptr.vmem [resolvable:$true] %s478_s13 }
  0x18   :  { %51 = vadd.xlane.f32.xlu0 %v50_v2  ;;  %622 = vmatpush3.bf16.msra.mxu1 %v621_v5  ;;  %v630_v16 = vpack.c.bf16 %v72_v15, %v71_v14  ;;  %v171_v34 = vld [vmem:[%s961_s3] sm:$0xff]  ;;  %v173_v36 = vld [vmem:[%s961_s3 + $0x10] sm:$0xff]  ;;  %v174_v38 = vld [vmem:[%s961_s3 + $0x18] sm:$0xff]  ;;  %s715_s14 = scalar_lea.vmem %s479_s13, 128  ;;  %p720_p9 = scmp.lt.s32.totalorder %s479_s13, %s479_s13 }
  0x19   :  { %623 = vmatprep.subr.bf16.mxu1 %v768_v8  ;;  %v633_v37 = vpack.c.bf16 %v172_v35, %v171_v34  ;;  %v636_v39 = vpack.c.bf16 %v174_v38, %v173_v36  ;;  %v503_v50 = vld [vmem:[%s962_s4] ss:$0 sm:$0xff]  ;;  %v272_v58 = vld [vmem:[%s963_s5 + $0x8] sm:$0xff]  ;;  %v273_v59 = vld [vmem:[%s963_s5 + $0x10] sm:$0xff]  ;;  %p716_p8 = scmp.ne.s32.totalorder %s479_s13, %s715_s14  ;;  %p721_p10 = scmp.lt.s32.totalorder %s715_s14, %s715_s14 }
  0x1a   :  { %v271_v57 = vld [vmem:[%s963_s5] sm:$0xff]  ;;  %v274_v61 = vld [vmem:[%s963_s5 + $0x18] sm:$0xff]  ;;  %v391_v36 = vld [vmem:[#allocation2 + $0x68] sm:$0xff] }
  0x1b   :  { %v639_v60 = vpack.c.bf16 %v272_v58, %v271_v57  ;;  %v642_v62 = vpack.c.bf16 %v274_v61, %v273_v59  ;;  %v390_v35 = vld [vmem:[#allocation2 + $0x60] sm:$0xff]  ;;  %v392_v38 = vld [vmem:[#allocation2 + $0x70] sm:$0xff]  ;;  %p722_p11 = por %p721_p10, %p720_p9 }
  0x1c   :  { %625 = vmatpush3.bf16.msra.mxu1 %v624_v10  ;;  %v505_v10 = vld [vmem:[%s964_s6] ss:$0 sm:$0xff]  ;;  %s771_s6 = smov 32  }
  0x1d   :  { %626 = vmatprep.subr.bf16.mxu1 %v768_v8  ;;  %p723_p12 = pnand %p722_p11, %p716_p8 }
  0x20   :  { %628 = vmatpush3.bf16.msra.mxu1 %v627_v13 }
  0x21   :  { %629 = vmatprep.subr.bf16.mxu1 %v768_v8 }
  0x24   :  { %631 = vmatpush3.bf16.msra.mxu1 %v630_v16 }
  0x25   :  { %632 = vmatprep.subr.bf16.mxu1 %v768_v8 }
  0xa5   :  { %v52_v17 = vpop.xlane.xlu0 %51 }
  0xa6   :  { %v54_v18 = vmul.f32 0.015625, %v52_v17  ;;  %v378_v17 = vld [vmem:[#allocation2] sm:$0xff] }
  0xa8   :  { %677 = vrsqrt.f32 %v54_v18  ;;  %vm57_vm2 = vcmp.eq.f32.partialorder %v54_v18, inf  ;;  %v60_v21 = vand.u32 2147483648, %v54_v18  ;;  %vm59_vm3 = vcmp.eq.f32.partialorder %v54_v18, 0.0 }
  0xb2   :  { %v678_v19 = vpop.eup %677 }
  0xb3   :  { %v56_v20 = vmul.f32 %v678_v19, %v54_v18  ;;  %v380_v19 = vld [vmem:[#allocation2 + $0x10] sm:$0xff] }
  0xb5   :  { %v58_v22 = vsel %vm57_vm2, %v54_v18, %v56_v20  ;;  %v379_v18 = vld [vmem:[#allocation2 + $0x8] sm:$0xff] }
  0xb6   :  { %v61_v23 = vsel %vm59_vm3, %v60_v21, %v58_v22  ;;  %v645_v20 = vpack.c.bf16 %v379_v18, %v378_v17  ;;  %v381_v21 = vld [vmem:[#allocation2 + $0x18] sm:$0xff] }
  0xb7   :  { %v62_v24 = vadd.f32 1e-08, %v61_v23  ;;  %v648_v22 = vpack.c.bf16 %v381_v21, %v380_v19  ;;  %v382_v23 = vld [vmem:[#allocation2 + $0x20] sm:$0xff] }
  0xb8   :  { %646 = vmatpush3.bf16.msra.mxu0 %v645_v20 }
  0xb9   :  { %679 = vrcp.f32 %v62_v24  ;;  %647 = vmatprep.subr.bf16.mxu0 %v768_v8  ;;  %v383_v24 = vld [vmem:[#allocation2 + $0x28] sm:$0xff] }
  0xbc   :  { %649 = vmatpush3.bf16.msra.mxu0 %v648_v22 }
  0xbd   :  { %650 = vmatprep.subr.bf16.mxu0 %v768_v8 }
  0xc3   :  { %v680_v25 = vpop.eup %679 }
  0xc4   :  { %v64_v26 = vmul.f32 %v680_v25, %v47_v0  ;;  %v651_v25 = vpack.c.bf16 %v383_v24, %v382_v23 }
  0xc6   :  { %561 = vmatmul.mubr.msk.f32.vlgmr.msra.gmra.mrb[0].mxu1 %vm49_vm0, %v64_v26  ;;  %v384_v26 = vld [vmem:[#allocation2 + $0x30] sm:$0xff]  ;;  %652 = vmatpush3.bf16.msra.mxu0 %v651_v25 }
  0xc7   :  { %571 = vmatprep.mubr.msk.f32.mxu1 %vm769_vm1, %v770_v9  ;;  %634 = vmatpush3.bf16.msra.mxu1 %v633_v37  ;;  %v663_v37 = vpack.c.bf16 %v391_v36, %v390_v35 }
  0xc8   :  { %635 = vmatprep.subr.bf16.mxu1 %v768_v8  ;;  %653 = vmatprep.subr.bf16.mxu0 %v768_v8 }
  0xcb   :  { %637 = vmatpush3.bf16.msra.mxu1 %v636_v39  ;;  %v393_v39 = vld [vmem:[#allocation2 + $0x78] sm:$0xff] }
  0xcc   :  { %638 = vmatprep.subr.bf16.mxu1 %v768_v8 }
 0x199   :  { %v149_v28 = vpop.f32.mrb[0].mxu1 }
 0x19a   :  { %v150_v29 = vadd.f32 %v501_v27, %v149_v28  ;;  %v562_v30 = vpop.f32.mrb[1].mxu1  ;;  %v385_v27 = vld [vmem:[#allocation2 + $0x38] sm:$0xff] }
 0x19b   :  { %v654_v28 = vpack.c.bf16 %v385_v27, %v384_v26  ;;  %v387_v30 = vld [vmem:[#allocation2 + $0x48] sm:$0xff] }
 0x19c   :  { %v153_v31 = vmax.f32 %v150_v29, 0.0  ;;  %v386_v29 = vld [vmem:[#allocation2 + $0x40] sm:$0xff] }
 0x19d   :  { %655 = vmatpush3.bf16.msra.mxu0 %v654_v28 }
 0x19e   :  { %v154_v32 = vmul.f32 %v153_v31, %v153_v31  ;;  %656 = vmatprep.subr.bf16.mxu0 %v768_v8 }
 0x1a0   :  { %v156_v33 = vsel %vm155_vm4, %v154_v32, 0.0  ;;  %v388_v32 = vld [vmem:[#allocation2 + $0x50] sm:$0xff] }
 0x1a1   :  { %157 = vadd.xlane.f32.xlu0 %v156_v33  ;;  %v389_v33 = vld [vmem:[#allocation2 + $0x58] sm:$0xff] }
 0x1a2   :  { %v660_v34 = vpack.c.bf16 %v389_v33, %v388_v32 }
 0x22e   :  { %v158_v40 = vpop.xlane.xlu0 %157 }
 0x22f   :  { %v160_v41 = vmul.f32 0.03125, %v158_v40  ;;  %v666_v40 = vpack.c.bf16 %v393_v39, %v392_v38 }
 0x231   :  { %681 = vrsqrt.f32 %v160_v41  ;;  %vm163_vm5 = vcmp.eq.f32.partialorder %v160_v41, inf  ;;  %v166_v44 = vand.u32 2147483648, %v160_v41  ;;  %vm165_vm6 = vcmp.eq.f32.partialorder %v160_v41, 0.0 }
 0x23b   :  { %v682_v42 = vpop.eup %681 }
 0x23c   :  { %v162_v43 = vmul.f32 %v682_v42, %v160_v41 }
 0x23e   :  { %v164_v45 = vsel %vm163_vm5, %v160_v41, %v162_v43 }
 0x23f   :  { %v167_v46 = vsel %vm165_vm6, %v166_v44, %v164_v45 }
 0x240   :  { %v168_v47 = vadd.f32 1e-08, %v167_v46 }
 0x242   :  { %683 = vrcp.f32 %v168_v47 }
 0x24c   :  { %v684_v48 = vpop.eup %683 }
 0x24d   :  { %v170_v49 = vmul.f32 %v684_v48, %v153_v31  ;;  %v657_v31 = vpack.c.bf16 %v387_v30, %v386_v29 }
 0x24f   :  { %572 = vmatmul.mubr.msk.f32.vlgmr.msra.gmra.mrb[2].mxu1 %vm155_vm4, %v170_v49  ;;  %658 = vmatpush3.bf16.msra.mxu0 %v657_v31 }
 0x250   :  { %582 = vmatprep.mubr.msk.f32.mxu1 %vm769_vm1, %v770_v9  ;;  %640 = vmatpush3.bf16.msra.mxu1 %v639_v60 }
 0x251   :  { %641 = vmatprep.subr.bf16.mxu1 %v768_v8  ;;  %659 = vmatprep.subr.bf16.mxu0 %v768_v8 }
 0x253   :  { %661 = vmatpush3.bf16.msra.mxu0 %v660_v34 }
 0x254   :  { %643 = vmatpush3.bf16.msra.mxu1 %v642_v62  ;;  %662 = vmatprep.subr.bf16.mxu0 %v768_v8 }
 0x257   :  { %664 = vmatpush3.bf16.msra.mxu0 %v663_v37 }
 0x258   :  { %665 = vmatprep.subr.bf16.mxu0 %v768_v8 }
 0x25b   :  { %667 = vmatpush3.bf16.msra.mxu0 %v666_v40 }
 0x322   :  { %v251_v51 = vpop.f32.mrb[2].mxu1 }
 0x323   :  { %v252_v52 = vadd.f32 %v503_v50, %v251_v51  ;;  %v573_v53 = vpop.f32.mrb[3].mxu1 }
 0x324   :  { %v464_v53 = vlaneseq }
 0x325   :  { %v255_v54 = vmax.f32 %v252_v52, 0.0 }
 0x327   :  { %v256_v55 = vmul.f32 %v255_v54, %v255_v54 }
 0x329   :  { %v257_v56 = vsel %vm155_vm4, %v256_v55, 0.0 }
 0x32a   :  { %258 = vadd.xlane.f32.xlu1 %v257_v56 }
 0x3b7   :  { %v259_v63 = vpop.xlane.xlu1 %258 }
 0x3b8   :  { %v260_v0 = vmul.f32 0.03125, %v259_v63 }
 0x3ba   :  { %685 = vrsqrt.f32 %v260_v0  ;;  %vm263_vm7 = vcmp.eq.f32.partialorder %v260_v0, inf  ;;  %v266_v3 = vand.u32 2147483648, %v260_v0  ;;  %vm265_vm8 = vcmp.eq.f32.partialorder %v260_v0, 0.0 }
 0x3c4   :  { %v686_v1 = vpop.eup %685 }
 0x3c5   :  { %v262_v2 = vmul.f32 %v686_v1, %v260_v0 }
 0x3c7   :  { %v264_v4 = vsel %vm263_vm7, %v260_v0, %v262_v2 }
 0x3c8   :  { %v267_v5 = vsel %vm265_vm8, %v266_v3, %v264_v4 }
 0x3c9   :  { %v268_v6 = vadd.f32 1e-08, %v267_v5 }
 0x3cb   :  { %687 = vrcp.f32 %v268_v6 }
 0x3d5   :  { %v688_v7 = vpop.eup %687 }
 0x3d6   :  { %v915_v9 = vmul.f32 %v688_v7, %v255_v54  ;;  %v465_v54 = vand.u32 127, %v464_v53 }
 0x3d8   :  { %583 = vmatmul.mubr.msk.f32.vlgmr.msra.gmra.mrb[4].mxu1 %vm155_vm4, %v915_v9  ;;  %vm466_vm11 = vcmp.lt.s32.totalorder %v465_v54, 10 }
 0x4ab   :  { %v351_v11 = vpop.f32.mrb[4].mxu1 }
 0x4ac   :  { %v352_v12 = vadd.f32 %v505_v10, %v351_v11  ;;  %v584_v13 = vpop.f32.mrb[5].mxu1 }
 0x4ae   :  { %v355_v14 = vmax.f32 %v352_v12, 0.0 }
 0x4b0   :  { %v356_v15 = vmul.f32 %v355_v14, %v355_v14 }
 0x4b2   :  { %v357_v16 = vsel %vm155_vm4, %v356_v15, 0.0 }
 0x4b3   :  { %358 = vadd.xlane.f32.xlu1 %v357_v16 }
 0x540   :  { %v359_v41 = vpop.xlane.xlu1 %358 }
 0x541   :  { %v360_v42 = vmul.f32 0.03125, %v359_v41 }
 0x543   :  { %689 = vrsqrt.f32 %v360_v42  ;;  %vm363_vm9 = vcmp.eq.f32.partialorder %v360_v42, inf  ;;  %v366_v45 = vand.u32 2147483648, %v360_v42  ;;  %vm365_vm10 = vcmp.eq.f32.partialorder %v360_v42, 0.0 }
 0x54d   :  { %v690_v43 = vpop.eup %689 }
 0x54e   :  { %v362_v44 = vmul.f32 %v690_v43, %v360_v42 }
 0x550   :  { %v364_v46 = vsel %vm363_vm9, %v360_v42, %v362_v44 }
 0x551   :  { %v367_v47 = vsel %vm365_vm10, %v366_v45, %v364_v46 }
 0x552   :  { %v368_v48 = vadd.f32 1e-08, %v367_v47 }
 0x554   :  { %691 = vrcp.f32 %v368_v48 }
 0x55e   :  { %v692_v49 = vpop.eup %691 }
 0x55f   :  { %v370_v50 = vmul.f32 %v692_v49, %v355_v14 }
 0x561   :  { %372 = vrot.lane.b32.xlu0 %v370_v50, %s771_s6 }
 0x5d3   :  { %v373_v51 = vpop.permute.xlu0 %372 }
 0x5d4   :  { %v375_v8 = vsel %vm155_vm4, %v915_v9, %v373_v51 }
 0x5d5   :  { %618 = vmatmul.mubr.msk.f32.vlgmr.msra.gmra.mrb[0].mxu0 %vm49_vm0, %v375_v8  ;;  %v376_v52 = vsel %vm49_vm0, %v375_v8, 0.0 }
 0x5d6   :  { %377 = vst [vmem:[#allocation5] sm:$0xff] %v376_v52 }
 0x6a8   :  { %v460_v55 = vpop.f32.mrb[0].mxu0 }
 0x6a9   :  { %v619_v56 = vpop.f32.mrb[1].mxu0  ;;  %v467_v57 = vsel %vm466_vm11, %v460_v55, -inf }
 0x6aa   :  { %468 = vmax.xlane.f32.xlu1 %v467_v57 }
 0x6ab   :  { %726 = shalt.err (!%p723_p12)
}
 0x6ac   :  { %s727_s17 = scalar_lea.hbm %s966_s8, 128 }
 0x6ad   :  { %p728_p13 = scmp.ne.s32.totalorder %s966_s8, %s727_s17  ;;  %p731_p0 = scmp.lt.u32.totalorder %s727_s17, %s966_s8 }
 0x6af   :  { %p733_p1 = pnand %p731_p0, %p728_p13 }
 0x6b1   :  { %736 = shalt.err (!%p733_p1)
}
 0x6b2   :  { %481 = dma.vmem_to_hbm [thread:$0]  %s479_s13, 128, %s966_s8, [#allocation4]  }
 0x6b3   :  { %s773_s23 = smov [#allocation6]  }
 0x6b4   :  { %s488_s24 = sshll.u32 %s773_s23, 4  ;;  %s489_s24 = int_to_ptr.vmem [resolvable:$true] %s488_s24 }
 0x6b5   :  { %s737_s2 = scalar_lea.vmem %s489_s24, 128  ;;  %p742_p3 = scmp.lt.s32.totalorder %s489_s24, %s489_s24 }
 0x6b6   :  { %p738_p2 = scmp.ne.s32.totalorder %s489_s24, %s737_s2  ;;  %p743_p4 = scmp.lt.s32.totalorder %s737_s2, %s737_s2 }
 0x6b8   :  { %p744_p5 = por %p743_p4, %p742_p3 }
 0x6ba   :  { %p745_p6 = pnand %p744_p5, %p738_p2 }
 0x737   :  { %v469_v58 = vpop.xlane.xlu1 %468 }
 0x738   :  { %v470_v59 = vsub.f32 %v460_v55, %v469_v58 }
 0x73a   :  { %471 = vst [vmem:[#allocation6] sm:$0xff] %v470_v59 }
 0x73b   :  { %748 = shalt.err (!%p745_p6)
}
 0x73c   :  { %s749_s26 = scalar_lea.hbm %s967_s9, 128 }
 0x73d   :  { %p750_p7 = scmp.ne.s32.totalorder %s967_s9, %s749_s26  ;;  %p753_p8 = scmp.lt.u32.totalorder %s749_s26, %s967_s9 }
 0x73f   :  { %p755_p9 = pnand %p753_p8, %p750_p7 }
 0x741   :  { %758 = shalt.err (!%p755_p9)
}
 0x742   :  { %491 = dma.vmem_to_hbm [thread:$0]  %s489_s24, 128, %s967_s9, [#allocation7]  }
 0x743   :  { %761 = dma.done.wait [#allocation4], 128  }
 0x744   :  { %762 = vsyncadd [#allocation4], 4294967168 }
 0x745   :  { %763 = dma.done.wait [#allocation7], 128  }
 0x746   :  { %764 = vsyncadd [#allocation7], 4294967168 }
 0x747   :  { %498 = vsyncpa [#allocation3], 1 }
 0x748   :  { %499 = vsyncpa [#allocation4], 1 }
 0x749   :  { %500 = vsyncpa [#allocation7], 1 }

</bundles_post_ra>
